<compile_context>
chip_gen: v7x
topology: tpu7x:2x2x1
jax: 0.10.0
libtpu: 0.0.40
codegen_flags: <defaults>
</compile_context>

<pallas_src>
import functools

import jax
import jax.numpy as jnp
from jax.experimental import pallas as pl
from jax.experimental.pallas import tpu as pltpu

_LANE = 128  # vreg lane width


def _round_up(x, m):
    return (x + m - 1) // m * m


def _row_tile_multiple(compute_dtype):
    # Rows per sublane tile: 8 for 32-bit, 16 for bf16, 32 for 8-bit dtypes.
    return 8 * max(1, 4 // jnp.dtype(compute_dtype).itemsize)


def _fused_mlp_kernel(alpha_ref, x_ref, w_first_ref, *rest, num_mid, compute_dtype):
    """One (row-tile, layer) grid step of the fused MLP (num_layers >= 2).

    grid = (row_tiles, num_layers); rows "parallel", layers "arbitrary".
      alpha_ref  : (1,) f32 SMEM        -- shared PReLU parameter
      x_ref      : (TM, P_in)           -- padded input row tile (compute_dtype)
      w_first_ref: (P_in, P_hid)        -- resident
      [w_mid_ref]: (P_hid, P_hid)       -- streamed / double-buffered per mid layer
      w_last_ref : (P_hid, P_out)       -- resident
      o_ref      : (TM, P_out) f32
      act_ref    : (TM, P_hid) scratch  -- persists across the layer axis
    """
    if num_mid > 0:
        w_mid_ref, w_last_ref, o_ref, act_ref = rest
    else:
        w_last_ref, o_ref, act_ref = rest

    l = pl.program_id(1)
    last = pl.num_programs(1) - 1
    a = alpha_ref[0]  # scalar, read once per grid step

    # NOTE: correctness of zero padding relies on PReLU(0) = 0 and bias-free
    # Linear; revisit if a bias / non-zero-preserving activation is added.
    @pl.when(l == 0)
    def _():
        y = jnp.dot(x_ref[...], w_first_ref[...],
                    preferred_element_type=jnp.float32)
        y = jnp.where(y > 0.0, y, a * y)   # PReLU; Dropout(p=0)/eval == identity
        act_ref[...] = y.astype(compute_dtype)

    if num_mid > 0:
        @pl.when(jnp.logical_and(l > 0, l < last))
        def _():
            y = jnp.dot(act_ref[...], w_mid_ref[...],
                        preferred_element_type=jnp.float32)
            y = jnp.where(y > 0.0, y, a * y)
            act_ref[...] = y.astype(compute_dtype)

    @pl.when(l == last)
    def _():
        y = jnp.dot(act_ref[...], w_last_ref[...],
                    preferred_element_type=jnp.float32)
        o_ref[...] = y.astype(o_ref.dtype)


def _single_linear_kernel(x_ref, w_ref, o_ref):
    """num_layers == 1: a single bias-free Linear (no PReLU)."""
    o_ref[...] = jnp.dot(x_ref[...], w_ref[...],
                         preferred_element_type=jnp.float32).astype(o_ref.dtype)


def pack_params(weights, compute_dtype=jnp.bfloat16):
    """Pad/cast/stack weights ONCE (outside the per-call path).

    weights: list of (d_in, d_out) f32 arrays (already transposed vs. nn.Linear).
    """
    num_layers = len(weights)
    in_dim = weights[0].shape[0]
    out_dim = weights[-1].shape[1]
    p_in = _round_up(in_dim, _LANE)
    p_out = _round_up(out_dim, _LANE)

    def pad2(w, r, c):
        return jnp.pad(w, ((0, r - w.shape[0]), (0, c - w.shape[1]))).astype(compute_dtype)

    packed = dict(num_layers=num_layers, in_dim=in_dim, out_dim=out_dim,
                  p_in=p_in, p_out=p_out, compute_dtype=compute_dtype)
    if num_layers == 1:
        packed.update(p_hid=0, w_first=pad2(weights[0], p_in, p_out),
                      w_mid=None, w_last=None)
        return packed

    hidden_dim = weights[0].shape[1]
    p_hid = _round_up(hidden_dim, _LANE)
    num_mid = num_layers - 2
    w_mid = (jnp.stack([pad2(w, p_hid, p_hid) for w in weights[1:-1]])
             if num_mid > 0 else None)
    packed.update(p_hid=p_hid,
                  w_first=pad2(weights[0], p_in, p_hid),
                  w_mid=w_mid,
                  w_last=pad2(weights[-1], p_hid, p_out))
    return packed


def feedforward_net(x, packed, alpha, dropout=0.0, tm_max=256):
    """Forward pass mirroring FeedForwardNet.forward (eval semantics / p=0.0).

    x: (N, in_dim) f32; packed from pack_params; alpha: (1,) f32 PReLU parameter.
    """
    # TODO(synk): training-mode dropout (p > 0) would need pltpu.prng_random_bits.
    assert dropout == 0.0, "only eval / p == 0 dropout is implemented"

    n, in_dim = x.shape
    assert in_dim == packed["in_dim"]
    cdt = packed["compute_dtype"]
    isz = jnp.dtype(cdt).itemsize
    num_layers = packed["num_layers"]
    p_in, p_out, out_dim = packed["p_in"], packed["p_out"], packed["out_dim"]

    # Row tile: multiple of the packed-sublane tile (16 rows for bf16), capped at
    # tm_max (256 fills the 256-row MXU on v6e/v7x; 128 is plenty on v5e).
    row_mult = _row_tile_multiple(cdt)
    tm = min(_round_up(tm_max, row_mult), _round_up(n, row_mult))
    n_pad = _round_up(n, tm)
    n_tiles = n_pad // tm

    x_pad = jnp.pad(x.astype(cdt), ((0, n_pad - n), (0, p_in - in_dim)))

    if num_layers == 1:
        w = packed["w_first"]  # (p_in, p_out)
        est = 2 * tm * (p_in * isz + p_out * 4) + 2 * p_in * p_out * isz
        out_pad = pl.pallas_call(
            _single_linear_kernel,
            out_shape=jax.ShapeDtypeStruct((n_pad, p_out), jnp.float32),
            grid_spec=pltpu.PrefetchScalarGridSpec(
                num_scalar_prefetch=0,
                grid=(n_tiles,),
                in_specs=[pl.BlockSpec((tm, p_in), lambda i: (i, 0)),
                          pl.BlockSpec((p_in, p_out), lambda i: (0, 0))],
                out_specs=pl.BlockSpec((tm, p_out), lambda i: (i, 0))),
            compiler_params=pltpu.CompilerParams(
                dimension_semantics=("parallel",),
                vmem_limit_bytes=int(min(max(2 * est, 32 * 2**20), 48 * 2**20))),
            cost_estimate=pl.CostEstimate(
                flops=2 * n_pad * p_in * p_out, transcendentals=0,
                bytes_accessed=n_pad * (p_in * isz + p_out * 4) + p_in * p_out * isz),
        )(x_pad, w)
        return out_pad[:n, :out_dim].astype(x.dtype)

    p_hid = packed["p_hid"]
    num_mid = num_layers - 2
    w_first, w_mid, w_last = packed["w_first"], packed["w_mid"], packed["w_last"]

    in_specs = [
        pl.BlockSpec(memory_space=pltpu.MemorySpace.SMEM),     # alpha scalar
        pl.BlockSpec((tm, p_in), lambda i, l: (i, 0)),         # input row tile
        pl.BlockSpec((p_in, p_hid), lambda i, l: (0, 0)),      # first weight (resident)
    ]
    args = [alpha, x_pad, w_first]
    if num_mid > 0:
        def _mid_index_map(i, l):
            # Streamed middle weight; clamp keeps the DMA in range at l=0 / l=last
            # (the block is unused there).
            m = jnp.minimum(jnp.maximum(l - 1, 0), num_mid - 1)
            return (m, 0, 0)
        in_specs.append(pl.BlockSpec((None, p_hid, p_hid), _mid_index_map))
        args.append(w_mid)
    in_specs.append(pl.BlockSpec((p_hid, p_out), lambda i, l: (0, 0)))  # last weight
    args.append(w_last)

    est = (2 * tm * p_in * isz + 2 * tm * p_out * 4
           + 2 * p_in * p_hid * isz + 2 * p_hid * p_out * isz
           + (4 * p_hid * p_hid * isz if num_mid > 0 else 0)
           + tm * p_hid * isz)
    flops = 2 * n_pad * (p_in * p_hid + num_mid * p_hid * p_hid + p_hid * p_out)
    bytes_accessed = (n_pad * (p_in * isz + p_out * 4)
                      + p_in * p_hid * isz + p_hid * p_out * isz
                      + n_tiles * num_mid * p_hid * p_hid * isz)

    kernel = functools.partial(_fused_mlp_kernel, num_mid=num_mid, compute_dtype=cdt)
    out_pad = pl.pallas_call(
        kernel,
        out_shape=jax.ShapeDtypeStruct((n_pad, p_out), jnp.float32),
        grid_spec=pltpu.PrefetchScalarGridSpec(
            num_scalar_prefetch=0,
            grid=(n_tiles, num_layers),
            in_specs=in_specs,
            out_specs=pl.BlockSpec((tm, p_out), lambda i, l: (i, 0)),
            scratch_shapes=[pltpu.VMEM((tm, p_hid), cdt)]),
        compiler_params=pltpu.CompilerParams(
            dimension_semantics=("parallel", "arbitrary"),
            vmem_limit_bytes=int(min(max(2 * est, 32 * 2**20), 48 * 2**20))),
        cost_estimate=pl.CostEstimate(
            flops=int(flops), transcendentals=0, bytes_accessed=int(bytes_accessed)),
    )(*args)

    return out_pad[:n, :out_dim].astype(x.dtype)


def init_feedforward_params(key, in_dim, hidden_dim, out_dim, num_layers):
    """Deterministic parameter init. Weights returned already transposed to (in, out)."""
    if num_layers == 1:
        dims = [(in_dim, out_dim)]
    else:
        dims = [(in_dim, hidden_dim)]
        dims += [(hidden_dim, hidden_dim)] * (num_layers - 2)
        dims += [(hidden_dim, out_dim)]
    weights = []
    for (d_in, d_out) in dims:
        key, sub = jax.random.split(key)
        bound = 1.0 / jnp.sqrt(d_in)  # kaiming-uniform-ish, matching nn.Linear's scale
        weights.append(
            jax.random.uniform(sub, (d_in, d_out), jnp.float32, -bound, bound))
    alpha = jnp.array([0.25], dtype=jnp.float32)  # nn.PReLU() default init
    return weights, alpha


def feedforward_ref_f32(x, weights, alpha):
    """Pure-JAX f32 reference (exact module semantics, eval / p=0.0)."""
    for i, w in enumerate(weights):
        x = x @ w
        if i < len(weights) - 1:
            x = jnp.where(x > 0, x, alpha[0] * x)
    return x


def feedforward_ref_bf16(x, weights, alpha):
    """Pure-JAX reference with the same bf16-operand / f32-accumulate recipe."""
    act = x.astype(jnp.bfloat16)
    y = act.astype(jnp.float32)
    for i, w in enumerate(weights):
        y = jnp.dot(act, w.astype(jnp.bfloat16), preferred_element_type=jnp.float32)
        if i < len(weights) - 1:
            y = jnp.where(y > 0, y, alpha[0] * y)
            act = y.astype(jnp.bfloat16)
    return y


if __name__ == "__main__":
    # Small shapes consistent with the module: x is (N, in_dim)
    N, in_dim, hidden_dim, out_dim, num_layers = 8, 32, 64, 16, 3

    key = jax.random.PRNGKey(0)
    key, kx = jax.random.split(key)
    x = jax.random.normal(kx, (N, in_dim), dtype=jnp.float32)

    weights, alpha = init_feedforward_params(
        key, in_dim, hidden_dim, out_dim, num_layers)
    packed = pack_params(weights)  # one-time packing, outside the per-call path

    out = jax.block_until_ready(feedforward_net(x, packed, alpha))
    assert out.shape == (N, out_dim)

    # Tight check against a reference using the identical bf16/f32 recipe.
    ref_bf16 = feedforward_ref_bf16(x, weights, alpha)
    assert jnp.allclose(out, ref_bf16, atol=1e-3, rtol=1e-3)

    # Looser check against the exact f32 module semantics (bf16 operand rounding).
    ref_f32 = feedforward_ref_f32(x, weights, alpha)
    assert jnp.allclose(out, ref_f32, atol=5e-2, rtol=5e-2)

    # Also exercise the no-middle-layer (L=2) and single-layer (L=1) paths.
    for L in (2, 1):
        w_l, a_l = init_feedforward_params(
            jax.random.PRNGKey(1), in_dim, hidden_dim, out_dim, L)
        o_l = jax.block_until_ready(feedforward_net(x, pack_params(w_l), a_l))
        assert o_l.shape == (N, out_dim)
        assert jnp.allclose(o_l, feedforward_ref_bf16(x, w_l, a_l),
                            atol=1e-3, rtol=1e-3)

    print("KERNEL_OK")
</pallas_src>

<mosaic_0001>
module attributes {stable_mosaic.version = 11 : i64} {
  func.func @_fused_mlp_kernel(%arg0: i32, %arg1: i32, %arg2: memref<1xf32, #tpu.memory_space<smem>>, %arg3: memref<16x128xbf16, #tpu.memory_space<vmem>>, %arg4: memref<128x128xbf16, #tpu.memory_space<vmem>>, %arg5: memref<1x128x128xbf16, #tpu.memory_space<vmem>>, %arg6: memref<128x128xbf16, #tpu.memory_space<vmem>>, %arg7: memref<16x128xf32, #tpu.memory_space<vmem>>, %arg8: memref<16x128xbf16, #tpu.memory_space<vmem>>) attributes {dimension_semantics = [#tpu.dimension_semantics<parallel>, #tpu.dimension_semantics<arbitrary>], iteration_bounds = array<i64: 1, 3>, scalar_prefetch = 0 : i64, scratch_operands = 1 : i64, tpu.core_type = #tpu.core_type<tc>, window_params = [{transform_indices = @transform_0, window_bounds = array<i64: 1>}, {transform_indices = @transform_1, window_bounds = array<i64: 16, 128>}, {pipeline_mode = #tpu.pipeline_mode<synchronous>, transform_indices = @transform_2, window_bounds = array<i64: 128, 128>}, {transform_indices = @transform_3, window_bounds = array<i64: 1, 128, 128>}, {pipeline_mode = #tpu.pipeline_mode<synchronous>, transform_indices = @transform_4, window_bounds = array<i64: 128, 128>}, {transform_indices = @transform_5, window_bounds = array<i64: 16, 128>}]} {
    %c0 = arith.constant 0 : index
    %0 = memref.load %arg2[%c0] : memref<1xf32, #tpu.memory_space<smem>>
    %c0_i32 = arith.constant 0 : i32
    %1 = arith.cmpi eq, %arg1, %c0_i32 : i32
    %2 = arith.extui %1 : i1 to i32
    %c0_i32_0 = arith.constant 0 : i32
    %3 = arith.cmpi ne, %2, %c0_i32_0 : i32
    scf.if %3 {
      %c0_5 = arith.constant 0 : index
      %c0_6 = arith.constant 0 : index
      %12 = vector.load %arg3[%c0_5, %c0_6] : memref<16x128xbf16, #tpu.memory_space<vmem>>, vector<16x128xbf16>
      %c0_7 = arith.constant 0 : index
      %c0_8 = arith.constant 0 : index
      %13 = vector.load %arg4[%c0_7, %c0_8] : memref<128x128xbf16, #tpu.memory_space<vmem>>, vector<128x128xbf16>
      %cst = arith.constant dense<0.000000e+00> : vector<16x128xf32>
      %14 = tpu.matmul %12, %13, %cst {dimension_numbers = #tpu.dot_dimension_numbers<[1], [0], [0], [1], [0, 0, 1, 1], [], []>} : vector<16x128xbf16>, vector<128x128xbf16>, vector<16x128xf32> -> vector<16x128xf32>
      %cst_9 = arith.constant 0.000000e+00 : f32
      %15 = vector.broadcast %cst_9 : f32 to vector<16x128xf32>
      %16 = arith.cmpf ogt, %14, %15 : vector<16x128xf32>
      %17 = vector.broadcast %0 : f32 to vector<16x128xf32>
      %18 = arith.mulf %17, %14 : vector<16x128xf32>
      %19 = arith.select %16, %14, %18 : vector<16x128xi1>, vector<16x128xf32>
      %20 = arith.truncf %19 : vector<16x128xf32> to vector<16x128xbf16>
      %c0_10 = arith.constant 0 : index
      %c0_11 = arith.constant 0 : index
      %21 = vector.load %arg8[%c0_10, %c0_11] : memref<16x128xbf16, #tpu.memory_space<vmem>>, vector<16x128xbf16>
      tpu.vector_store %arg8[%c0_10, %c0_11], %20 {strides = array<i32>} : memref<16x128xbf16, #tpu.memory_space<vmem>>, vector<16x128xbf16>,
    } else {
    }
    %c0_i32_1 = arith.constant 0 : i32
    %4 = arith.cmpi sgt, %arg1, %c0_i32_1 : i32
    %c2_i32 = arith.constant 2 : i32
    %5 = arith.cmpi slt, %arg1, %c2_i32 : i32
    %6 = arith.andi %4, %5 : i1
    %7 = arith.extui %6 : i1 to i32
    %c0_i32_2 = arith.constant 0 : i32
    %8 = arith.cmpi ne, %7, %c0_i32_2 : i32
    scf.if %8 {
      %c0_5 = arith.constant 0 : index
      %c0_6 = arith.constant 0 : index
      %12 = vector.load %arg8[%c0_5, %c0_6] : memref<16x128xbf16, #tpu.memory_space<vmem>>, vector<16x128xbf16>
      %c0_7 = arith.constant 0 : index
      %c0_8 = arith.constant 0 : index
      %c0_9 = arith.constant 0 : index
      %13 = vector.load %arg5[%c0_7, %c0_8, %c0_9] : memref<1x128x128xbf16, #tpu.memory_space<vmem>>, vector<1x128x128xbf16>
      %14 = vector.shape_cast %13 : vector<1x128x128xbf16> to vector<128x128xbf16>
      %cst = arith.constant dense<0.000000e+00> : vector<16x128xf32>
      %15 = tpu.matmul %12, %14, %cst {dimension_numbers = #tpu.dot_dimension_numbers<[1], [0], [0], [1], [0, 0, 1, 1], [], []>} : vector<16x128xbf16>, vector<128x128xbf16>, vector<16x128xf32> -> vector<16x128xf32>
      %cst_10 = arith.constant 0.000000e+00 : f32
      %16 = vector.broadcast %cst_10 : f32 to vector<16x128xf32>
      %17 = arith.cmpf ogt, %15, %16 : vector<16x128xf32>
      %18 = vector.broadcast %0 : f32 to vector<16x128xf32>
      %19 = arith.mulf %18, %15 : vector<16x128xf32>
      %20 = arith.select %17, %15, %19 : vector<16x128xi1>, vector<16x128xf32>
      %21 = arith.truncf %20 : vector<16x128xf32> to vector<16x128xbf16>
      %c0_11 = arith.constant 0 : index
      %c0_12 = arith.constant 0 : index
      %22 = vector.load %arg8[%c0_11, %c0_12] : memref<16x128xbf16, #tpu.memory_space<vmem>>, vector<16x128xbf16>
      tpu.vector_store %arg8[%c0_11, %c0_12], %21 {strides = array<i32>} : memref<16x128xbf16, #tpu.memory_space<vmem>>, vector<16x128xbf16>,
    } else {
    }
    %c2_i32_3 = arith.constant 2 : i32
    %9 = arith.cmpi eq, %arg1, %c2_i32_3 : i32
    %10 = arith.extui %9 : i1 to i32
    %c0_i32_4 = arith.constant 0 : i32
    %11 = arith.cmpi ne, %10, %c0_i32_4 : i32
    scf.if %11 {
      %c0_5 = arith.constant 0 : index
      %c0_6 = arith.constant 0 : index
      %12 = vector.load %arg8[%c0_5, %c0_6] : memref<16x128xbf16, #tpu.memory_space<vmem>>, vector<16x128xbf16>
      %c0_7 = arith.constant 0 : index
      %c0_8 = arith.constant 0 : index
      %13 = vector.load %arg6[%c0_7, %c0_8] : memref<128x128xbf16, #tpu.memory_space<vmem>>, vector<128x128xbf16>
      %cst = arith.constant dense<0.000000e+00> : vector<16x128xf32>
      %14 = tpu.matmul %12, %13, %cst {dimension_numbers = #tpu.dot_dimension_numbers<[1], [0], [0], [1], [0, 0, 1, 1], [], []>} : vector<16x128xbf16>, vector<128x128xbf16>, vector<16x128xf32> -> vector<16x128xf32>
      %c0_9 = arith.constant 0 : index
      %c0_10 = arith.constant 0 : index
      %15 = vector.load %arg7[%c0_9, %c0_10] : memref<16x128xf32, #tpu.memory_space<vmem>>, vector<16x128xf32>
      tpu.vector_store %arg7[%c0_9, %c0_10], %14 {strides = array<i32>} : memref<16x128xf32, #tpu.memory_space<vmem>>, vector<16x128xf32>,
    } else {
    }
    return
  }
  func.func @transform_0(%arg0: i32, %arg1: i32) -> i32 {
    %c0_i32 = arith.constant 0 : i32
    %c0_i32_0 = arith.constant 0 : i32
    return %c0_i32 : i32
  }
  func.func @transform_1(%arg0: i32, %arg1: i32) -> (i32, i32) {
    %c0_i32 = arith.constant 0 : i32
    %c0_i32_0 = arith.constant 0 : i32
    return %arg0, %c0_i32 : i32, i32
  }
  func.func @transform_2(%arg0: i32, %arg1: i32) -> (i32, i32) {
    %c0_i32 = arith.constant 0 : i32
    %c0_i32_0 = arith.constant 0 : i32
    %c0_i32_1 = arith.constant 0 : i32
    return %c0_i32, %c0_i32_0 : i32, i32
  }
  func.func @transform_3(%arg0: i32, %arg1: i32) -> (i32, i32, i32) {
    %c1_i32 = arith.constant 1 : i32
    %0 = arith.subi %arg1, %c1_i32 : i32
    %c0_i32 = arith.constant 0 : i32
    %1 = arith.maxsi %0, %c0_i32 : i32
    %c0_i32_0 = arith.constant 0 : i32
    %2 = arith.minsi %1, %c0_i32_0 : i32
    %c0_i32_1 = arith.constant 0 : i32
    %c0_i32_2 = arith.constant 0 : i32
    %c0_i32_3 = arith.constant 0 : i32
    return %2, %c0_i32_1, %c0_i32_2 : i32, i32, i32
  }
  func.func @transform_4(%arg0: i32, %arg1: i32) -> (i32, i32) {
    %c0_i32 = arith.constant 0 : i32
    %c0_i32_0 = arith.constant 0 : i32
    %c0_i32_1 = arith.constant 0 : i32
    return %c0_i32, %c0_i32_0 : i32, i32
  }
  func.func @transform_5(%arg0: i32, %arg1: i32) -> (i32, i32) {
    %c0_i32 = arith.constant 0 : i32
    %c0_i32_0 = arith.constant 0 : i32
    return %arg0, %c0_i32 : i32, i32
  }
}

</mosaic_0001>

<bundles_post_ra>
// kernel: tpu_custom_call.1
= control target key start
LH: loop header
LB: loop body
LE: loop exit
PB: predicated region body
PF: predicated region fallthrough
CT: control target
= control target key end

     0   :  { %s1461_s0 = inlined_call_operand.<no memory space> [shape: f32[1], index: 0, kind: input, shape index: {}]   ;;  %s1462_s1 = inlined_call_operand.hbm [shape: bf16[16,128], index: 1, kind: input, shape index: {}]   ;;  %s1463_s2 = inlined_call_operand.hbm [shape: bf16[128,128], index: 2, kind: input, shape index: {}]   ;;  %s1464_s3 = inlined_call_operand.hbm [shape: bf16[1,128,128], index: 3, kind: input, shape index: {}]   ;;  %s1465_s4 = inlined_call_operand.hbm [shape: bf16[128,128], index: 4, kind: input, shape index: {}]   ;;  %s1466_s5 = inlined_call_operand.hbm [shape: f32[16,128], index: 5, kind: output, shape index: {}]  }
   0x1   :  { %10 = sst [smem:[#allocation3]] %s1461_s0 }
   0x2   :  { %11 = vsyncpa [#allocation5], 0 }
   0x3   :  { %12 = vsyncpa [#allocation8], 0 }
   0x4   :  { %13 = vsyncpa [#allocation6], 0  ;;  %s1269_s20 = smov 0   ;;  %s1271_s21 = smov 0  }
   0x5   :  { %s1273_s22 = smov 0  }
   0x6 LB: > { %s1285_s0 = sadd.s32 4294967295, %s1219_s22   ;;  %s28_s23 = sadd.s32 1, %s1215_s21  ;;  %s1219_s22 = sphi %s1273_s22, %s19_s22   ;;  %s1215_s21 = sphi %s1271_s21, %s1484_s21   ;;  %s1211_s20 = sphi %s1269_s20, %s1483_s20  }
   0x7   : > { %p29_p0 = scmp.ge.s32.totalorder %s28_s23, 3  ;;  %p1467_p1 = scmp.eq.s32.totalorder %s1285_s0, 0 }
   0x8   : > { %p797_p2 = scmp.ge.s32.totalorder %s1219_s22, 1  ;;  %p187_p3 = scmp.lt.s32.totalorder %s1219_s22, 4 }
   0x9   : > { %s1486_s23 = smov (%p29_p0, %s28_s23), 0  ;;  %s1221_s25 = smov [#allocation4]  }
   0xa   : > { %p1293_p4 = pnand %p797_p2, %p187_p3  ;;  %s205_s26 = sshll.u32 %s1221_s25, 4  ;;  %s206_s26 = int_to_ptr.vmem [resolvable:$true] %s205_s26 }
   0xb   : > { %s1222_s28 = smov [#allocation7]   ;;  %s1039_s7 = scalar_lea.hbm %s1462_s1, 128 }
   0xc   : > { %s1469_s24 = scalar_select %p1293_p4, 1, 0 }
   0xd   : > { %p952_p5 = pneg %p1293_p4  ;;  %s218_s29 = sshll.u32 %s1222_s28, 4  ;;  %s219_s29 = int_to_ptr.vmem [resolvable:$true] %s218_s29 }
   0xe   : > { %p1040_p7 = scmp.ne.s32.totalorder %s1462_s1, %s1039_s7  ;;  %p1046_p11 = scmp.lt.u32.totalorder %s1039_s7, %s1462_s1 }
   0xf   : > { %p1301_p6 = pnand %p952_p5, %p1467_p1 }
  0x11   : > { %p1313_p8 = pneg %p1301_p6 }
  0x13   : > { %p1042_p9 = pnand %p1313_p8, %p1040_p7 }
  0x15   : > { %p1043_p10 = pneg %p1042_p9 }
  0x17   : > { %p1048_p12 = pnand %p1046_p11, %p1043_p10 }
  0x19   : > { %1051 = shalt.err (!%p1048_p12)
}
  0x1a   : > { %s1052_s13 = scalar_lea.vmem %s206_s26, 128  ;;  %p1060_p3 = scmp.lt.s32.totalorder %s206_s26, %s206_s26 }
  0x1b   : > { %p1053_p13 = scmp.ne.s32.totalorder %s206_s26, %s1052_s13  ;;  %p1061_p5 = scmp.lt.s32.totalorder %s1052_s13, %s1052_s13 }
  0x1d   : > { %p1055_p0 = pnand %p1053_p13, %p1313_p8  ;;  %p1062_p1 = por %p1061_p5, %p1060_p3 }
  0x1f   : > { %p1056_p2 = pneg %p1055_p0 }
  0x21   : > { %p1063_p4 = pnand %p1062_p1, %p1056_p2 }
  0x23   : > { %1066 = shalt.err (!%p1063_p4)
}
  0x24   : > { %s1223_s14 = smov 64   ;;  %s1224_s15 = smov 4  }
  0x25   : > { %955 = dma.hbm_to_vmem [thread:$0]  (!%p1301_p6), %s1462_s1, 128, %s206_s26, [#allocation5], %s1223_s14, %s1223_s14, %s1224_s15  }
  0x26   : > { %s1225_s18 = smov [#allocation10]   ;;  %s1067_s30 = scalar_lea.hbm %s1463_s2, 1024 }
  0x27   : > { %s231_s19 = sshll.u32 %s1225_s18, 4  ;;  %p1068_p1 = scmp.ne.s32.totalorder %s1463_s2, %s1067_s30  ;;  %s232_s19 = int_to_ptr.vmem [resolvable:$true] %s231_s19 }
  0x28   : > { %p1074_p9 = scmp.lt.u32.totalorder %s1067_s30, %s1463_s2 }
  0x29   : > { %p1070_p4 = pnand %p1068_p1, %p1313_p8 }
  0x2b   : > { %p1071_p7 = pneg %p1070_p4 }
  0x2d   : > { %p1076_p10 = pnand %p1074_p9, %p1071_p7 }
  0x2f   : > { %1079 = shalt.err (!%p1076_p10)
}
  0x30   : > { %s1080_s26 = scalar_lea.vmem %s219_s29, 1024  ;;  %p1088_p0 = scmp.lt.s32.totalorder %s219_s29, %s219_s29 }
  0x31   : > { %p1081_p11 = scmp.ne.s32.totalorder %s219_s29, %s1080_s26  ;;  %p1089_p2 = scmp.lt.s32.totalorder %s1080_s26, %s1080_s26 }
  0x33   : > { %p1083_p12 = pnand %p1081_p11, %p1313_p8  ;;  %p1090_p3 = por %p1089_p2, %p1088_p0 }
  0x35   : > { %p1084_p13 = pneg %p1083_p12 }
  0x37   : > { %p1091_p5 = pnand %p1090_p3, %p1084_p13 }
  0x39   : > { %1094 = shalt.err (!%p1091_p5)
}
  0x3a   : > { %958 = dma.hbm_to_vmem [thread:$0]  (!%p1301_p6), %s1463_s2, 1024, %s219_s29, [#allocation8], %s1223_s14, %s1223_s14, %s1224_s15  }
  0x3b   : > { %s1095_s17 = scalar_lea.hbm %s1465_s4, 1024 }
  0x3c   : > { %p1096_p4 = scmp.ne.s32.totalorder %s1465_s4, %s1095_s17  ;;  %p1102_p10 = scmp.lt.u32.totalorder %s1095_s17, %s1465_s4 }
  0x3e   : > { %p1098_p7 = pnand %p1096_p4, %p1313_p8 }
  0x40   : > { %p1099_p9 = pneg %p1098_p7 }
  0x42   : > { %p1104_p11 = pnand %p1102_p10, %p1099_p9 }
  0x44   : > { %1107 = shalt.err (!%p1104_p11)
}
  0x45   : > { %s1108_s29 = scalar_lea.vmem %s232_s19, 1024  ;;  %p1116_p2 = scmp.lt.s32.totalorder %s232_s19, %s232_s19 }
  0x46   : > { %p1109_p12 = scmp.ne.s32.totalorder %s232_s19, %s1108_s29  ;;  %p1117_p3 = scmp.lt.s32.totalorder %s1108_s29, %s1108_s29 }
  0x48   : > { %p1111_p13 = pnand %p1109_p12, %p1313_p8  ;;  %p1118_p5 = por %p1117_p3, %p1116_p2 }
  0x4a   : > { %p1112_p0 = pneg %p1111_p13 }
  0x4c   : > { %p1119_p1 = pnand %p1118_p5, %p1112_p0 }
  0x4e   : > { %1122 = shalt.err (!%p1119_p1)
}
  0x4f   : > { %961 = dma.hbm_to_vmem [thread:$0]  (!%p1301_p6), %s1465_s4, 1024, %s232_s19, [#allocation8], %s1223_s14, %s1223_s14, %s1224_s15  }
  0x50   : > { %p969_p4 = scmp.lt.s32.totalorder %s1219_s22, 3  ;;  %s245_s10 = sand.u32 1, %s1219_s22  }
  0x51   : > { %s1226_s8 = smov [#allocation9]   ;;  %p1472_p8 = scmp.eq.s32.totalorder %s1219_s22, 0 }
  0x52   : > { %s261_s9 = sshll.u32 %s1226_s8, 4  ;;  %s246_s27 = scalar_lea.sflag [#allocation5], %s245_s10  ;;  %s262_s9 = int_to_ptr.vmem [resolvable:$true] %s261_s9 }
  0x53   : > { %p1379_p7 = pnand %p969_p4, %p1472_p8  ;;  %s1123_s13 = scalar_lea.hbm %s1464_s3, 1024 }
  0x54   : > { %p1124_p6 = scmp.ne.s32.totalorder %s1464_s3, %s1123_s13  ;;  %p1130_p11 = scmp.lt.u32.totalorder %s1123_s13, %s1464_s3 }
  0x55   : > { %p1125_p1 = pneg %p1379_p7 }
  0x57   : > { %p1126_p9 = pnand %p1125_p1, %p1124_p6 }
  0x59   : > { %p1127_p10 = pneg %p1126_p9 }
  0x5b   : > { %p1132_p12 = pnand %p1130_p11, %p1127_p10 }
  0x5d   : > { %1135 = shalt.err (!%p1132_p12)
}
  0x5e   : > { %s1136_s25 = scalar_lea.vmem %s262_s9, 1024  ;;  %s1143_s28 = scalar_lea.vmem %s262_s9, 2048 }
  0x5f   : > { %p1137_p13 = scmp.ne.s32.totalorder %s262_s9, %s1136_s25  ;;  %p1144_p3 = scmp.lt.s32.totalorder %s262_s9, %s262_s9 }
  0x60   : > { %p1145_p5 = scmp.lt.s32.totalorder %s1143_s28, %s1136_s25 }
  0x61   : > { %p1139_p0 = pnand %p1137_p13, %p1125_p1 }
  0x62   : > { %p1146_p4 = por %p1145_p5, %p1144_p3 }
  0x63   : > { %p1140_p2 = pneg %p1139_p0 }
  0x65   : > { %p1147_p8 = pnand %p1146_p4, %p1140_p2 }
  0x67   : > { %1150 = shalt.err (!%p1147_p8)
}
  0x68   : > { %965 = dma.hbm_to_vmem [thread:$0]  (!%p1379_p7), %s1464_s3, 1024, %s262_s9, %s246_s27, %s1223_s14, %s1223_s14, %s1224_s15  }
  0x69   : > { %p1474_p6 = scmp.ne.s32.totalorder %s1469_s24, 0 }
  0x6a   : > { %p1475_p1 = scmp.eq.s32.totalorder (!%p1474_p6), %s1285_s0, 0 }
  0x6b   : > { %273 = sbr.rel (%p1474_p6) target bundleno = 909 (0x38d), region = 40 }
  0x72   : > { %1190 = dma.done.wait (%p1475_p1), [#allocation5], 128   ;;  %p1476_p9 = pmov %p1475_p1 }
  0x73   : > { %p1477_p10 = pmov %p1475_p1 }
  0x74   : > { %1192 = vsyncadd (%p1476_p9), [#allocation5], 4294967168 }
  0x75   : > { %1194 = dma.done.wait (%p1477_p10), [#allocation8], 1024   ;;  %p1478_p11 = pmov %p1475_p1 }
  0x76   : > { %s283_s6 = sand.u32 1, %s1285_s0   ;;  %p1479_p7 = pmov %p1475_p1 }
  0x77   : > { %1196 = vsyncadd (%p1478_p11), [#allocation8], 4294966272  ;;  %s284_s7 = scalar_lea.sflag [#allocation5], %s283_s6 }
  0x78   : > { %1198 = dma.done.wait (%p1479_p7), %s284_s7, 1024   ;;  %p1480_p12 = pmov %p1475_p1 }
  0x79   : > { %p1481_p13 = pmov %p1475_p1 }
  0x7a   : > { %1200 = vsyncadd (%p1480_p12), %s284_s7, 4294966272 }
  0x7b   : > { %1202 = dma.done.wait (%p1481_p13), [#allocation8], 1024   ;;  %p1482_p0 = pmov %p1475_p1 }
  0x7c   : > { %s1421_s24 = sld [smem:[#allocation3]]  ;;  %p816_p2 = scmp.ne.s32.totalorder %s1211_s20, 0 }
  0x7d   : > { %1204 = vsyncadd (%p1482_p0), [#allocation8], 4294966272  ;;  %v1014_v0 = vld [vmem:[#allocation7] sm:$0xff] (!%p816_p2)   ;;  %v1227_v1 = vmov (!%p816_p2), 0.0   ;;  %v1015_v2 = vld [vmem:[#allocation7 + $0x8] sm:$0xff] (!%p816_p2)   ;;  %vm1228_vm0 = vmmov (!%p816_p2), 0  }
  0x7e   : > { %325 = sbr.rel (%p816_p2) target bundleno = 378 (0x17a), region = 60  ;;  %874 = vmatprep.subr.bf16.mxu0 (!%p816_p2), %v1227_v1  ;;  %890 = vmatprep.mubr.msk.bf16.mxu0 (!%p816_p2), %vm1228_vm0, %v1227_v1  ;;  %v1016_v3 = vld [vmem:[#allocation7 + $0x10] sm:$0xff] (!%p816_p2)   ;;  %v1017_v4 = vld [vmem:[#allocation7 + $0x18] sm:$0xff] (!%p816_p2)   ;;  %v1018_v5 = vld [vmem:[#allocation7 + $0x20] sm:$0xff] (!%p816_p2)  }
  0x7f   : > { %875 = vmatpush3.bf16.msra.mxu0 (!%p816_p2), %v1014_v0  ;;  %v1019_v6 = vld [vmem:[#allocation7 + $0x28] sm:$0xff] (!%p816_p2)   ;;  %v1020_v7 = vld [vmem:[#allocation7 + $0x30] sm:$0xff] (!%p816_p2)   ;;  %v1021_v8 = vld [vmem:[#allocation7 + $0x38] sm:$0xff] (!%p816_p2)  }
  0x80   : > { %876 = vmatprep.subr.bf16.mxu0 (!%p816_p2), %v1227_v1  ;;  %v1022_v9 = vld [vmem:[#allocation4] sm:$0xff] (!%p816_p2)  }
  0x82   : > { %v441_v10 = vstv (!%p816_p2), %s1421_s24 }
  0x83   : > { %877 = vmatpush3.bf16.msra.mxu0 (!%p816_p2), %v1015_v2 }
  0x84   : > { %878 = vmatprep.subr.bf16.mxu0 (!%p816_p2), %v1227_v1 }
  0x87   : > { %879 = vmatpush3.bf16.msra.mxu0 %v1016_v3 }
  0x88   : > { %880 = vmatprep.subr.bf16.mxu0 %v1227_v1 }
  0x8b   : > { %881 = vmatpush3.bf16.msra.mxu0 %v1017_v4 }
  0x8c   : > { %882 = vmatprep.subr.bf16.mxu0 %v1227_v1 }
  0x8f   : > { %883 = vmatpush3.bf16.msra.mxu0 %v1018_v5 }
  0x90   : > { %884 = vmatprep.subr.bf16.mxu0 %v1227_v1 }
  0x93   : > { %885 = vmatpush3.bf16.msra.mxu0 %v1019_v6 }
  0x94   : > { %886 = vmatprep.subr.bf16.mxu0 %v1227_v1 }
  0x97   : > { %887 = vmatpush3.bf16.msra.mxu0 %v1020_v7 }
  0x98   : > { %888 = vmatprep.subr.bf16.mxu0 %v1227_v1 }
  0x9b   : > { %889 = vmatpush3.bf16.msra.mxu0 %v1021_v8 }
  0x9e   : > { %891 = vmatmul.mubr.bf16.vlgmr.msra.gmra.mrb[0].mxu0 %v1022_v9 }
 0x171   : > { %v432_v11 = vpop.f32.mrb[0].mxu0 }
 0x172   : > { %v442_v12 = vmul.f32 %v441_v10, %v432_v11  ;;  %v892_v13 = vpop.f32.mrb[1].mxu0  ;;  %vm439_vm1 = vcmp.gt.f32.partialorder %v432_v11, 0.0 }
 0x173   : > { %v435_v14 = vpop.f32.mrb[2].mxu0 }
 0x174   : > { %vm440_vm2 = vcmp.gt.f32.partialorder %v435_v14, 0.0  ;;  %v443_v15 = vmul.f32 %v441_v10, %v435_v14  ;;  %v893_v16 = vpop.f32.mrb[3].mxu0  ;;  %v444_v17 = vsel %vm439_vm1, %v432_v11, %v442_v12 }
 0x176   : > { %v445_v18 = vsel %vm440_vm2, %v435_v14, %v443_v15 }
 0x177   : > { %v446_v19 = vpack.c.bf16 %v445_v18, %v444_v17 }
 0x179   : > { %447 = vst [vmem:[#allocation2] sm:$0xff] %v446_v19 }
 0x17a PF: > { %p448_p3 = scmp.gt.s32.totalorder %s1211_s20, 0  ;;  %p449_p5 = scmp.lt.s32.totalorder %s1211_s20, 2 }
 0x17c   : > { %p450_p4 = pnand %p449_p5, %p448_p3 }
 0x17d   : > { %v1023_v20 = vld [vmem:[#allocation9] sm:$0xff] (!%p450_p4)   ;;  %v1229_v21 = vmov (!%p450_p4), 0.0   ;;  %v1024_v22 = vld [vmem:[#allocation9 + $0x8] sm:$0xff] (!%p450_p4)   ;;  %vm1230_vm3 = vmmov (!%p450_p4), 0   ;;  %v1025_v23 = vld [vmem:[#allocation9 + $0x10] sm:$0xff] (!%p450_p4)   ;;  %v562_v30 = vstv (!%p450_p4), %s1421_s24 }
 0x17e   : > { %453 = sbr.rel (%p450_p4) target bundleno = 634 (0x27a), region = 64  ;;  %894 = vmatprep.subr.bf16.mxu0 (!%p450_p4), %v1229_v21  ;;  %910 = vmatprep.mubr.msk.bf16.mxu0 (!%p450_p4), %vm1230_vm3, %v1229_v21  ;;  %v1026_v24 = vld [vmem:[#allocation9 + $0x18] sm:$0xff] (!%p450_p4)   ;;  %v1027_v25 = vld [vmem:[#allocation9 + $0x20] sm:$0xff] (!%p450_p4)   ;;  %v1028_v26 = vld [vmem:[#allocation9 + $0x28] sm:$0xff] (!%p450_p4)  }
 0x17f   : > { %895 = vmatpush3.bf16.msra.mxu0 (!%p450_p4), %v1023_v20  ;;  %v1029_v27 = vld [vmem:[#allocation9 + $0x30] sm:$0xff] (!%p450_p4)   ;;  %v1030_v28 = vld [vmem:[#allocation9 + $0x38] sm:$0xff] (!%p450_p4)  }
 0x180   : > { %896 = vmatprep.subr.bf16.mxu0 (!%p450_p4), %v1229_v21  ;;  %v454_v29 = vld [vmem:[#allocation2] sm:$0xff] (!%p450_p4) }
 0x183   : > { %897 = vmatpush3.bf16.msra.mxu0 (!%p450_p4), %v1024_v22 }
 0x184   : > { %898 = vmatprep.subr.bf16.mxu0 (!%p450_p4), %v1229_v21 }
 0x187   : > { %899 = vmatpush3.bf16.msra.mxu0 %v1025_v23 }
 0x188   : > { %900 = vmatprep.subr.bf16.mxu0 %v1229_v21 }
 0x18b   : > { %901 = vmatpush3.bf16.msra.mxu0 %v1026_v24 }
 0x18c   : > { %902 = vmatprep.subr.bf16.mxu0 %v1229_v21 }
 0x18f   : > { %903 = vmatpush3.bf16.msra.mxu0 %v1027_v25 }
 0x190   : > { %904 = vmatprep.subr.bf16.mxu0 %v1229_v21 }
 0x193   : > { %905 = vmatpush3.bf16.msra.mxu0 %v1028_v26 }
 0x194   : > { %906 = vmatprep.subr.bf16.mxu0 %v1229_v21 }
 0x197   : > { %907 = vmatpush3.bf16.msra.mxu0 %v1029_v27 }
 0x198   : > { %908 = vmatprep.subr.bf16.mxu0 %v1229_v21 }
 0x19b   : > { %909 = vmatpush3.bf16.msra.mxu0 %v1030_v28 }
 0x19e   : > { %911 = vmatmul.mubr.bf16.vlgmr.msra.gmra.mrb[0].mxu0 %v454_v29 }
 0x271   : > { %v553_v31 = vpop.f32.mrb[0].mxu0 }
 0x272   : > { %v563_v32 = vmul.f32 %v562_v30, %v553_v31  ;;  %v912_v33 = vpop.f32.mrb[1].mxu0  ;;  %vm560_vm4 = vcmp.gt.f32.partialorder %v553_v31, 0.0 }
 0x273   : > { %v556_v34 = vpop.f32.mrb[2].mxu0 }
 0x274   : > { %vm561_vm5 = vcmp.gt.f32.partialorder %v556_v34, 0.0  ;;  %v564_v35 = vmul.f32 %v562_v30, %v556_v34  ;;  %v913_v36 = vpop.f32.mrb[3].mxu0  ;;  %v565_v37 = vsel %vm560_vm4, %v553_v31, %v563_v32 }
 0x276   : > { %v566_v38 = vsel %vm561_vm5, %v556_v34, %v564_v35 }
 0x277   : > { %v567_v39 = vpack.c.bf16 %v566_v38, %v565_v37 }
 0x279   : > { %568 = vst [vmem:[#allocation2] sm:$0xff] %v567_v39 }
 0x27a PF: > { %p834_p8 = scmp.ne.s32.totalorder %s1211_s20, 2 }
 0x27b   : > { %v1031_v40 = vld [vmem:[#allocation10] sm:$0xff] (!%p834_p8)   ;;  %v1231_v41 = vmov (!%p834_p8), 0.0   ;;  %v1032_v42 = vld [vmem:[#allocation10 + $0x8] sm:$0xff] (!%p834_p8)   ;;  %vm1232_vm6 = vmmov (!%p834_p8), 0   ;;  %v1033_v43 = vld [vmem:[#allocation10 + $0x10] sm:$0xff] (!%p834_p8)  }
 0x27c   : > { %572 = sbr.rel (%p834_p8) target bundleno = 883 (0x373), region = 68  ;;  %914 = vmatprep.subr.bf16.mxu0 (!%p834_p8), %v1231_v41  ;;  %930 = vmatprep.mubr.msk.bf16.mxu0 (!%p834_p8), %vm1232_vm6, %v1231_v41  ;;  %v1034_v44 = vld [vmem:[#allocation10 + $0x18] sm:$0xff] (!%p834_p8)   ;;  %v1035_v45 = vld [vmem:[#allocation10 + $0x20] sm:$0xff] (!%p834_p8)   ;;  %v1036_v46 = vld [vmem:[#allocation10 + $0x28] sm:$0xff] (!%p834_p8)  }
 0x27d   : > { %915 = vmatpush3.bf16.msra.mxu0 (!%p834_p8), %v1031_v40  ;;  %v1037_v47 = vld [vmem:[#allocation10 + $0x30] sm:$0xff] (!%p834_p8)   ;;  %v1038_v48 = vld [vmem:[#allocation10 + $0x38] sm:$0xff] (!%p834_p8)  }
 0x27e   : > { %916 = vmatprep.subr.bf16.mxu0 (!%p834_p8), %v1231_v41 }
 0x280   : > { %v573_v49 = vld [vmem:[#allocation2] sm:$0xff] (!%p834_p8) }
 0x281   : > { %917 = vmatpush3.bf16.msra.mxu0 (!%p834_p8), %v1032_v42 }
 0x282   : > { %918 = vmatprep.subr.bf16.mxu0 (!%p834_p8), %v1231_v41 }
 0x285   : > { %919 = vmatpush3.bf16.msra.mxu0 %v1033_v43 }
 0x286   : > { %920 = vmatprep.subr.bf16.mxu0 %v1231_v41 }
 0x289   : > { %921 = vmatpush3.bf16.msra.mxu0 %v1034_v44 }
 0x28a   : > { %922 = vmatprep.subr.bf16.mxu0 %v1231_v41 }
 0x28d   : > { %923 = vmatpush3.bf16.msra.mxu0 %v1035_v45 }
 0x28e   : > { %924 = vmatprep.subr.bf16.mxu0 %v1231_v41 }
 0x291   : > { %925 = vmatpush3.bf16.msra.mxu0 %v1036_v46 }
 0x292   : > { %926 = vmatprep.subr.bf16.mxu0 %v1231_v41 }
 0x295   : > { %927 = vmatpush3.bf16.msra.mxu0 %v1037_v47 }
 0x296   : > { %928 = vmatprep.subr.bf16.mxu0 %v1231_v41 }
 0x299   : > { %929 = vmatpush3.bf16.msra.mxu0 %v1038_v48 }
 0x29c   : > { %931 = vmatmul.mubr.bf16.vlgmr.msra.gmra.mrb[0].mxu0 %v573_v49 }
 0x36f   : > { %v672_v50 = vpop.f32.mrb[0].mxu0 }
 0x370   : > { %679 = vst [vmem:[#allocation11] sm:$0xff] %v672_v50  ;;  %v932_v51 = vpop.f32.mrb[1].mxu0 }
 0x371   : > { %v675_v52 = vpop.f32.mrb[2].mxu0 }
 0x372   : > { %680 = vst [vmem:[#allocation11 + $0x8] sm:$0xff] %v675_v52  ;;  %v933_v53 = vpop.f32.mrb[3].mxu0 }
 0x373 PF: > { %p973_p6 = scmp.eq.s32.totalorder %s1285_s0, 2  ;;  %s1233_s20 = smov [#allocation11]  }
 0x374   : > { %s690_s14 = sshll.u32 %s1233_s20, 4  ;;  %s691_s14 = int_to_ptr.vmem [resolvable:$true] %s690_s14 }
 0x375   : > { %s1151_s15 = scalar_lea.vmem %s691_s14, 256  ;;  %p1158_p11 = scmp.lt.s32.totalorder %s691_s14, %s691_s14 }
 0x376   : > { %p1152_p1 = scmp.ne.s32.totalorder %s691_s14, %s1151_s15  ;;  %p1159_p7 = scmp.lt.s32.totalorder %s1151_s15, %s1151_s15 }
 0x378   : > { %p1153_p9 = pnand %p1152_p1, %p973_p6  ;;  %p1160_p12 = por %p1159_p7, %p1158_p11 }
 0x37a   : > { %p1154_p10 = pneg %p1153_p9 }
 0x37c   : > { %p1161_p13 = pnand %p1160_p12, %p1154_p10 }
 0x37e   : > { %1164 = shalt.err (!%p1161_p13)
}
 0x37f   : > { %s1165_s9 = scalar_lea.hbm %s1466_s5, 256 }
 0x380   : > { %p1166_p0 = scmp.ne.s32.totalorder %s1466_s5, %s1165_s9  ;;  %p1171_p5 = scmp.lt.u32.totalorder %s1165_s9, %s1466_s5 }
 0x382   : > { %p1167_p2 = pnand %p1166_p0, %p973_p6 }
 0x384   : > { %p1168_p3 = pneg %p1167_p2 }
 0x386   : > { %p1173_p4 = pnand %p1171_p5, %p1168_p3 }
 0x388   : > { %1176 = shalt.err (!%p1173_p4)
}
 0x389   : > { %s1234_s13 = smov 128   ;;  %s1235_s16 = smov 8  }
 0x38a   : > { %949 = dma.vmem_to_hbm [thread:$0]  (%p973_p6), %s691_s14, 256, %s1466_s5, [#allocation6], %s1234_s13, %s1234_s13, %s1235_s16  }
 0x38b   : > { %1206 = dma.done.wait (%p973_p6), [#allocation6], 256  }
 0x38c   : > { %1208 = vsyncadd (%p973_p6), [#allocation6], 4294967040 }
 0x38d PF: > { %s19_s22 = sadd.s32 1, %s1219_s22   ;;  %s1483_s20 = smov %s1215_s21 }
 0x38e   : > { %p16_p8 = scmp.ge.s32.totalorder %s19_s22, 5   ;;  %s1484_s21 = smov %s1486_s23 }
 0x390   :  { %18 = sbr.rel (!%p16_p8) target bundleno = 6 (0x6), region = 102 }
 0x397   :  { %706 = vsyncpa [#allocation5], 1 }
 0x398   :  { %708 = vsyncpa [#allocation5 + $0x1], 1 }
 0x399   :  { %709 = vsyncpa [#allocation8], 1 }
 0x39a   :  { %710 = vsyncpa [#allocation6], 1 }
 0x39b   :  { %712 = vsyncpa [#allocation6 + $0x1], 1 }

</bundles_post_ra>
